<compile_context>
chip_gen: v7x
topology: tpu7x:2x2x1
jax: 0.10.0
libtpu: 0.0.40
codegen_flags: <defaults>
</compile_context>

<pallas_src>
import functools

import jax
import jax.numpy as jnp
from jax.experimental import pallas as pl
from jax.experimental.pallas import tpu as pltpu


# --------------------------------------------------------------------------
# Kernel 1: h1 = relu(x @ W1 + b1), W1 streamed over K (reduction) and N
# (parallel).  x is resident as a (NUM_K, B, TK) slab; acc is f32 VMEM.
# --------------------------------------------------------------------------
def h1_kernel(x_ref, w1_ref, b1_ref, h1_ref, acc_ref):
    k = pl.program_id(1)

    @pl.when(k == 0)
    def _init():
        acc_ref[...] = jnp.zeros_like(acc_ref)

    # bf16 x bf16 on the MXU, f32 accumulation; no VPU work on this path.
    acc_ref[...] += jnp.dot(
        x_ref[k], w1_ref[...], preferred_element_type=jnp.float32
    )

    @pl.when(k == pl.num_programs(1) - 1)
    def _finalize():
        # bias + ReLU written back into the accumulator (bounds epilogue
        # VMEM/vreg pressure); Dropout = eval-mode identity.
        acc_ref[...] = jnp.maximum(acc_ref[...] + b1_ref[...], 0.0)
        h1_ref[...] = acc_ref[...].astype(h1_ref.dtype)


# --------------------------------------------------------------------------
# Kernel 2: h2 = relu(h1 @ W2 + b2); concat = h2 @ Wh + bh (5 heads as one
# matmul -> directly yields torch.cat([...], 1)); fc = concat @ Wc + bc.
# W2 is streamed over its own reduction axis; head/class_fc weights resident.
# --------------------------------------------------------------------------
def tail_kernel(h1_ref, w2_ref, b2_ref, wh_ref, bh_ref, wc_ref, bc_ref,
                concat_ref, fc_ref, acc_ref):
    k = pl.program_id(0)

    @pl.when(k == 0)
    def _init():
        acc_ref[...] = jnp.zeros_like(acc_ref)

    acc_ref[...] += jnp.dot(
        h1_ref[...], w2_ref[...], preferred_element_type=jnp.float32
    )

    @pl.when(k == pl.num_programs(0) - 1)
    def _finalize():
        # Reuse the accumulator for h2 (bias + ReLU in place).
        acc_ref[...] = jnp.maximum(acc_ref[...] + b2_ref[...], 0.0)
        concat = jnp.dot(
            acc_ref[...].astype(wh_ref.dtype), wh_ref[...],
            preferred_element_type=jnp.float32,
        ) + bh_ref[...]
        concat_ref[...] = concat.astype(concat_ref.dtype)
        fc = jnp.dot(
            concat.astype(wc_ref.dtype), wc_ref[...],
            preferred_element_type=jnp.float32,
        ) + bc_ref[...]
        fc_ref[...] = fc.astype(fc_ref.dtype)


# --------------------------------------------------------------------------
# Shape / tiling helpers
# --------------------------------------------------------------------------
def _round_up(n, m):
    return ((n + m - 1) // m) * m


def _vmem_limit_bytes():
    """~75% of physical VMEM: 48 MiB on v7x (64 MiB), 96 MiB on v5e/v6e."""
    try:
        cap = int(pltpu.get_tpu_info().vmem_capacity_bytes)
    except Exception:
        cap = 64 << 20          # assume the tightest budget (v7x)
    return (cap * 3) // 4


def _pick_n_tile(d_hid):
    """Column tile of W1: >=2 blocks when possible so the 'parallel' grid axis
    can be split across v7x's two TensorCores (each streams half of W1)."""
    for tn in (2048, 1024, 512, 256, 128):
        if tn < d_hid and d_hid % tn == 0:
            return tn
    return d_hid


def _pick_k_tile(total_k, n_width, budget_bytes, max_tile, elt_bytes=2):
    """Largest multiple-of-128 EXACT divisor of total_k (no dead padded bytes
    streamed) whose double-buffered (tk, n_width) bf16 block fits the budget."""
    best, t = 128, 128
    while t <= min(total_k, max_tile):
        if total_k % t == 0 and 2 * t * n_width * elt_bytes <= budget_bytes:
            best = t
        t += 128
    return best


# --------------------------------------------------------------------------
# One-time offline parameter prep (pad + cast) -- NOT done per forward call.
# --------------------------------------------------------------------------
def prepare_params(params, head_dims):
    """Pad to TPU-friendly shapes and cast weights to bf16 once (biases f32)."""
    w1, b1, w2, b2, wh, bh, wc, bc = params
    d_in, d_hid = w1.shape
    assert d_hid % 128 == 0, "hidden width must be lane-aligned (multiple of 128)"
    d_cat = wh.shape[1]
    n_cls = wc.shape[1]
    d_in_pad = _round_up(d_in, 128)
    d_cat_pad = _round_up(d_cat, 128)
    n_cls_pad = _round_up(n_cls, 128)
    bf = jnp.bfloat16
    w1p = jnp.pad(w1, ((0, d_in_pad - d_in), (0, 0))).astype(bf)
    w2p = w2.astype(bf)
    whp = jnp.pad(wh, ((0, 0), (0, d_cat_pad - d_cat))).astype(bf)
    bhp = jnp.pad(bh, ((0, 0), (0, d_cat_pad - d_cat))).astype(jnp.float32)
    wcp = jnp.pad(wc, ((0, d_cat_pad - d_cat), (0, n_cls_pad - n_cls))).astype(bf)
    bcp = jnp.pad(bc, ((0, 0), (0, n_cls_pad - n_cls))).astype(jnp.float32)
    return (w1p, b1.astype(jnp.float32), w2p, b2.astype(jnp.float32),
            whp, bhp, wcp, bcp)


# --------------------------------------------------------------------------
# Forward wrapper
# --------------------------------------------------------------------------
@functools.partial(jax.jit, static_argnames=("head_dims", "max_k_tile"))
def mtlnc_forward(x, prepped, head_dims, max_k_tile=4096):
    """Fused Pallas forward of MTLNC_Shared_FC_A's post-backbone layers.

    head_dims = (num_classes, num_makes, num_models, num_submodels,
                 num_generation).  Returns (fc, make_out, model_out,
    submodel_out, generation_out), matching the PyTorch module.
    """
    w1p, b1, w2p, b2, whp, bhp, wcp, bcp = prepped
    B, d_in = x.shape
    d_in_pad, d_hid = w1p.shape
    d_cat_pad = whp.shape[1]
    n_cls_pad = wcp.shape[1]
    d_cat = sum(head_dims)
    n_cls = head_dims[0]

    vmem_limit = _vmem_limit_bytes()
    b_pad = _round_up(B, 16)                    # bf16 vregs pack (16, 128)
    tn = _pick_n_tile(d_hid)                    # W1 column split (megacore)
    tk = _pick_k_tile(d_in_pad, tn, vmem_limit // 2, max_k_tile)
    tk2 = _pick_k_tile(d_hid, d_hid, vmem_limit // 2, max_k_tile)
    nh, num_k, num_k2 = d_hid // tn, d_in_pad // tk, d_hid // tk2

    # Per-call ACTIVATION prep only (weights were prepped offline).
    xp = jnp.pad(x.astype(jnp.bfloat16),
                 ((0, b_pad - B), (0, d_in_pad - d_in)))
    # Lay x out as (NUM_K, B, TK): VMEM-resident, indexed along the leading
    # axis in-kernel -> no per-K-step x DMA.
    xk = xp.reshape(b_pad, num_k, tk).transpose(1, 0, 2)

    # ---- kernel 1: h1 = relu(x @ W1 + b1) ----------------------------------
    h1 = pl.pallas_call(
        h1_kernel,
        out_shape=jax.ShapeDtypeStruct((b_pad, d_hid), jnp.bfloat16),
        grid_spec=pltpu.PrefetchScalarGridSpec(
            num_scalar_prefetch=0,
            grid=(nh, num_k),                                 # N parallel, K reduction
            in_specs=[
                pl.BlockSpec((num_k, b_pad, tk), lambda n, k: (0, 0, 0)),  # x (resident)
                pl.BlockSpec((tk, tn), lambda n, k: (k, n)),               # W1 (streamed)
                pl.BlockSpec((1, tn), lambda n, k: (0, n)),                # b1
            ],
            out_specs=pl.BlockSpec((b_pad, tn), lambda n, k: (0, n)),
            scratch_shapes=[pltpu.VMEM((b_pad, tn), jnp.float32)],
        ),
        compiler_params=pltpu.CompilerParams(
            dimension_semantics=("parallel", "arbitrary"),
            vmem_limit_bytes=vmem_limit,
        ),
    )(xk, w1p, b1)

    # ---- kernel 2: classifier tail + 5 heads + class_fc (W2 streamed) ------
    concat_p, fc_p = pl.pallas_call(
        tail_kernel,
        out_shape=(
            jax.ShapeDtypeStruct((b_pad, d_cat_pad), jnp.float32),
            jax.ShapeDtypeStruct((b_pad, n_cls_pad), jnp.float32),
        ),
        grid_spec=pltpu.PrefetchScalarGridSpec(
            num_scalar_prefetch=0,
            grid=(num_k2,),
            in_specs=[
                pl.BlockSpec((b_pad, tk2), lambda k: (0, k)),             # h1 (streamed)
                pl.BlockSpec((tk2, d_hid), lambda k: (k, 0)),             # W2 (streamed)
                pl.BlockSpec((1, d_hid), lambda k: (0, 0)),               # b2
                pl.BlockSpec((d_hid, d_cat_pad), lambda k: (0, 0)),       # heads W
                pl.BlockSpec((1, d_cat_pad), lambda k: (0, 0)),           # heads b
                pl.BlockSpec((d_cat_pad, n_cls_pad), lambda k: (0, 0)),   # class_fc W
                pl.BlockSpec((1, n_cls_pad), lambda k: (0, 0)),           # class_fc b
            ],
            out_specs=(
                pl.BlockSpec((b_pad, d_cat_pad), lambda k: (0, 0)),
                pl.BlockSpec((b_pad, n_cls_pad), lambda k: (0, 0)),
            ),
            scratch_shapes=[pltpu.VMEM((b_pad, d_hid), jnp.float32)],
        ),
        compiler_params=pltpu.CompilerParams(
            dimension_semantics=("arbitrary",),
            vmem_limit_bytes=vmem_limit,
        ),
    )(h1, w2p, b2, whp, bhp, wcp, bcp)

    # Strip padding; split heads (concat order: class, make, model, submodel,
    # generation) -- returns match MTLNC_Shared_FC_A.forward.
    n_classes, n_makes, n_models, n_submodels, n_generation = head_dims
    concat = concat_p[:B, :d_cat]
    fc = fc_p[:B, :n_cls]
    o = n_classes
    make_out = concat[:, o:o + n_makes]; o += n_makes
    model_out = concat[:, o:o + n_models]; o += n_models
    submodel_out = concat[:, o:o + n_submodels]; o += n_submodels
    generation_out = concat[:, o:o + n_generation]
    return fc, make_out, model_out, submodel_out, generation_out


# --------------------------------------------------------------------------
# Deterministic parameter init (PyTorch nn.Linear-style uniform), f32.
# --------------------------------------------------------------------------
def _linear_params(key, fan_in, fan_out):
    kw, kb = jax.random.split(key)
    bound = 1.0 / jnp.sqrt(jnp.float32(fan_in))
    w = jax.random.uniform(kw, (fan_in, fan_out), jnp.float32, -bound, bound)
    b = jax.random.uniform(kb, (1, fan_out), jnp.float32, -bound, bound)
    return w, b


def make_params(key, d_in, d_hid, head_dims):
    num_classes = head_dims[0]
    keys = jax.random.split(key, 3 + len(head_dims))
    w1, b1 = _linear_params(keys[0], d_in, d_hid)     # classifier Linear 1
    w2, b2 = _linear_params(keys[1], d_hid, d_hid)    # classifier Linear 2
    # Five heads, concatenated along the output axis in torch.cat order.
    head_ws, head_bs = [], []
    for k, n_out in zip(keys[2:2 + len(head_dims)], head_dims):
        w, b = _linear_params(k, d_hid, n_out)
        head_ws.append(w); head_bs.append(b)
    wh = jnp.concatenate(head_ws, axis=1)
    bh = jnp.concatenate(head_bs, axis=1)
    wc, bc = _linear_params(keys[2 + len(head_dims)], sum(head_dims), num_classes)
    return (w1, b1, w2, b2, wh, bh, wc, bc)


# --------------------------------------------------------------------------
# Plain-JAX reference mirroring the kernel's dtype handling (sanity check)
# --------------------------------------------------------------------------
def reference_forward(x, params, head_dims):
    w1, b1, w2, b2, wh, bh, wc, bc = params
    bf = jnp.bfloat16
    h1 = jnp.maximum(
        jnp.dot(x.astype(bf), w1.astype(bf), preferred_element_type=jnp.float32)
        + b1, 0.0)
    h1 = h1.astype(bf)   # kernel 1 stores h1 in bf16 between the two calls
    h2 = jnp.maximum(
        jnp.dot(h1, w2.astype(bf), preferred_element_type=jnp.float32) + b2, 0.0)
    concat = jnp.dot(h2.astype(bf), wh.astype(bf),
                     preferred_element_type=jnp.float32) + bh
    fc = jnp.dot(concat.astype(bf), wc.astype(bf),
                 preferred_element_type=jnp.float32) + bc
    n_classes, n_makes, n_models, n_submodels, n_generation = head_dims
    o = n_classes
    make_out = concat[:, o:o + n_makes]; o += n_makes
    model_out = concat[:, o:o + n_models]; o += n_models
    submodel_out = concat[:, o:o + n_submodels]; o += n_submodels
    generation_out = concat[:, o:o + n_generation]
    return fc, make_out, model_out, submodel_out, generation_out


if __name__ == "__main__":
    # Small shapes consistent with the module's structure
    # (real module: D_IN=25088, D_HID=4096, TK -> 1792/3584 per chip).
    B = 8
    D_IN = 1024
    D_HID = 256
    # (num_classes, num_makes, num_models, num_submodels, num_generation)
    HEAD_DIMS = (32, 8, 16, 24, 16)

    key = jax.random.PRNGKey(0)
    kx, kp = jax.random.split(key)

    # x = flattened base.features output (see layout comment above).
    x = jax.random.normal(kx, (B, D_IN), jnp.float32)
    params = make_params(kp, D_IN, D_HID, HEAD_DIMS)
    prepped = prepare_params(params, HEAD_DIMS)   # one-time offline pad+cast

    # max_k_tile=128 forces multi-step K streaming even at these tiny demo
    # shapes so the accumulation / pipelining paths are exercised; at real
    # shapes the default (4096) picks 1792 (v7x) / 3584 (v5e/v6e).
    outs = mtlnc_forward(x, prepped, HEAD_DIMS, max_k_tile=128)
    outs = jax.block_until_ready(outs)

    refs = reference_forward(x, params, HEAD_DIMS)
    names = ("fc", "make", "model", "submodel", "generation")
    for name, o, r in zip(names, outs, refs):
        assert o.shape == r.shape, (name, o.shape, r.shape)
        assert jnp.allclose(o, r, atol=1e-2, rtol=1e-2), f"{name} mismatch vs reference"

    print("KERNEL_OK")
</pallas_src>

<mosaic_0001>
module attributes {stable_mosaic.version = 11 : i64} {
  func.func @h1_kernel(%arg0: i32, %arg1: i32, %arg2: memref<8x16x128xbf16, #tpu.memory_space<vmem>>, %arg3: memref<128x128xbf16, #tpu.memory_space<vmem>>, %arg4: memref<1x128xf32, #tpu.memory_space<vmem>>, %arg5: memref<16x128xbf16, #tpu.memory_space<vmem>>, %arg6: memref<16x128xf32, #tpu.memory_space<vmem>>) attributes {dimension_semantics = [#tpu.dimension_semantics<parallel>, #tpu.dimension_semantics<arbitrary>], iteration_bounds = array<i64: 2, 8>, scalar_prefetch = 0 : i64, scratch_operands = 1 : i64, tpu.core_type = #tpu.core_type<tc>, window_params = [{pipeline_mode = #tpu.pipeline_mode<synchronous>, transform_indices = @transform_0, window_bounds = array<i64: 8, 16, 128>}, {transform_indices = @transform_1, window_bounds = array<i64: 128, 128>}, {transform_indices = @transform_2, window_bounds = array<i64: 1, 128>}, {transform_indices = @transform_3, window_bounds = array<i64: 16, 128>}]} {
    %c0_i32 = arith.constant 0 : i32
    %0 = arith.cmpi eq, %arg1, %c0_i32 : i32
    %1 = arith.extui %0 : i1 to i32
    %c0_i32_0 = arith.constant 0 : i32
    %2 = arith.cmpi ne, %1, %c0_i32_0 : i32
    scf.if %2 {
      %cst_9 = arith.constant 0.000000e+00 : f32
      %14 = vector.broadcast %cst_9 : f32 to vector<16x128xf32>
      %c0_10 = arith.constant 0 : index
      %c0_11 = arith.constant 0 : index
      %15 = vector.load %arg6[%c0_10, %c0_11] : memref<16x128xf32, #tpu.memory_space<vmem>>, vector<16x128xf32>
      tpu.vector_store %arg6[%c0_10, %c0_11], %14 {strides = array<i32>} : memref<16x128xf32, #tpu.memory_space<vmem>>, vector<16x128xf32>,
    } else {
    }
    %c0 = arith.constant 0 : index
    %c0_1 = arith.constant 0 : index
    %3 = vector.load %arg6[%c0, %c0_1] : memref<16x128xf32, #tpu.memory_space<vmem>>, vector<16x128xf32>
    %4 = arith.index_cast %arg1 : i32 to index
    %c0_2 = arith.constant 0 : index
    %c0_3 = arith.constant 0 : index
    %5 = vector.load %arg2[%4, %c0_2, %c0_3] : memref<8x16x128xbf16, #tpu.memory_space<vmem>>, vector<1x16x128xbf16>
    %6 = vector.shape_cast %5 : vector<1x16x128xbf16> to vector<16x128xbf16>
    %c0_4 = arith.constant 0 : index
    %c0_5 = arith.constant 0 : index
    %7 = vector.load %arg3[%c0_4, %c0_5] : memref<128x128xbf16, #tpu.memory_space<vmem>>, vector<128x128xbf16>
    %cst = arith.constant dense<0.000000e+00> : vector<16x128xf32>
    %8 = tpu.matmul %6, %7, %cst {dimension_numbers = #tpu.dot_dimension_numbers<[1], [0], [0], [1], [0, 0, 1, 1], [], []>} : vector<16x128xbf16>, vector<128x128xbf16>, vector<16x128xf32> -> vector<16x128xf32>
    %9 = arith.addf %3, %8 : vector<16x128xf32>
    %c0_6 = arith.constant 0 : index
    %c0_7 = arith.constant 0 : index
    %10 = vector.load %arg6[%c0_6, %c0_7] : memref<16x128xf32, #tpu.memory_space<vmem>>, vector<16x128xf32>
    tpu.vector_store %arg6[%c0_6, %c0_7], %9 {strides = array<i32>} : memref<16x128xf32, #tpu.memory_space<vmem>>, vector<16x128xf32>,
    %c7_i32 = arith.constant 7 : i32
    %11 = arith.cmpi eq, %arg1, %c7_i32 : i32
    %12 = arith.extui %11 : i1 to i32
    %c0_i32_8 = arith.constant 0 : i32
    %13 = arith.cmpi ne, %12, %c0_i32_8 : i32
    scf.if %13 {
      %c0_9 = arith.constant 0 : index
      %c0_10 = arith.constant 0 : index
      %14 = vector.load %arg6[%c0_9, %c0_10] : memref<16x128xf32, #tpu.memory_space<vmem>>, vector<16x128xf32>
      %c0_11 = arith.constant 0 : index
      %c0_12 = arith.constant 0 : index
      %15 = vector.load %arg4[%c0_11, %c0_12] : memref<1x128xf32, #tpu.memory_space<vmem>>, vector<1x128xf32>
      %16 = vector.broadcast %15 : vector<1x128xf32> to vector<16x128xf32>
      %17 = arith.addf %14, %16 : vector<16x128xf32>
      %cst_13 = arith.constant 0.000000e+00 : f32
      %18 = vector.broadcast %cst_13 : f32 to vector<16x128xf32>
      %19 = arith.maximumf %17, %18 : vector<16x128xf32>
      %c0_14 = arith.constant 0 : index
      %c0_15 = arith.constant 0 : index
      %20 = vector.load %arg6[%c0_14, %c0_15] : memref<16x128xf32, #tpu.memory_space<vmem>>, vector<16x128xf32>
      tpu.vector_store %arg6[%c0_14, %c0_15], %19 {strides = array<i32>} : memref<16x128xf32, #tpu.memory_space<vmem>>, vector<16x128xf32>,
      %c0_16 = arith.constant 0 : index
      %c0_17 = arith.constant 0 : index
      %21 = vector.load %arg6[%c0_16, %c0_17] : memref<16x128xf32, #tpu.memory_space<vmem>>, vector<16x128xf32>
      %22 = arith.truncf %21 : vector<16x128xf32> to vector<16x128xbf16>
      %c0_18 = arith.constant 0 : index
      %c0_19 = arith.constant 0 : index
      %23 = vector.load %arg5[%c0_18, %c0_19] : memref<16x128xbf16, #tpu.memory_space<vmem>>, vector<16x128xbf16>
      tpu.vector_store %arg5[%c0_18, %c0_19], %22 {strides = array<i32>} : memref<16x128xbf16, #tpu.memory_space<vmem>>, vector<16x128xbf16>,
    } else {
    }
    return
  }
  func.func @transform_0(%arg0: i32, %arg1: i32) -> (i32, i32, i32) {
    %c0_i32 = arith.constant 0 : i32
    %c0_i32_0 = arith.constant 0 : i32
    %c0_i32_1 = arith.constant 0 : i32
    %c0_i32_2 = arith.constant 0 : i32
    return %c0_i32, %c0_i32_0, %c0_i32_1 : i32, i32, i32
  }
  func.func @transform_1(%arg0: i32, %arg1: i32) -> (i32, i32) {
    %c0_i32 = arith.constant 0 : i32
    return %arg1, %arg0 : i32, i32
  }
  func.func @transform_2(%arg0: i32, %arg1: i32) -> (i32, i32) {
    %c0_i32 = arith.constant 0 : i32
    %c0_i32_0 = arith.constant 0 : i32
    return %c0_i32, %arg0 : i32, i32
  }
  func.func @transform_3(%arg0: i32, %arg1: i32) -> (i32, i32) {
    %c0_i32 = arith.constant 0 : i32
    %c0_i32_0 = arith.constant 0 : i32
    return %c0_i32, %arg0 : i32, i32
  }
}

module attributes {stable_mosaic.version = 11 : i64} {
  func.func @tail_kernel(%arg0: i32, %arg1: memref<16x128xbf16, #tpu.memory_space<vmem>>, %arg2: memref<128x256xbf16, #tpu.memory_space<vmem>>, %arg3: memref<1x256xf32, #tpu.memory_space<vmem>>, %arg4: memref<256x128xbf16, #tpu.memory_space<vmem>>, %arg5: memref<1x128xf32, #tpu.memory_space<vmem>>, %arg6: memref<128x128xbf16, #tpu.memory_space<vmem>>, %arg7: memref<1x128xf32, #tpu.memory_space<vmem>>, %arg8: memref<16x128xf32, #tpu.memory_space<vmem>>, %arg9: memref<16x128xf32, #tpu.memory_space<vmem>>, %arg10: memref<16x256xf32, #tpu.memory_space<vmem>>) attributes {dimension_semantics = [#tpu.dimension_semantics<arbitrary>], iteration_bounds = array<i64: 2>, scalar_prefetch = 0 : i64, scratch_operands = 1 : i64, tpu.core_type = #tpu.core_type<tc>, window_params = [{transform_indices = @transform_0, window_bounds = array<i64: 16, 128>}, {transform_indices = @transform_1, window_bounds = array<i64: 128, 256>}, {pipeline_mode = #tpu.pipeline_mode<synchronous>, transform_indices = @transform_2, window_bounds = array<i64: 1, 256>}, {pipeline_mode = #tpu.pipeline_mode<synchronous>, transform_indices = @transform_3, window_bounds = array<i64: 256, 128>}, {pipeline_mode = #tpu.pipeline_mode<synchronous>, transform_indices = @transform_4, window_bounds = array<i64: 1, 128>}, {pipeline_mode = #tpu.pipeline_mode<synchronous>, transform_indices = @transform_5, window_bounds = array<i64: 128, 128>}, {pipeline_mode = #tpu.pipeline_mode<synchronous>, transform_indices = @transform_6, window_bounds = array<i64: 1, 128>}, {pipeline_mode = #tpu.pipeline_mode<synchronous>, transform_indices = @transform_7, window_bounds = array<i64: 16, 128>}, {pipeline_mode = #tpu.pipeline_mode<synchronous>, transform_indices = @transform_8, window_bounds = array<i64: 16, 128>}]} {
    %c0_i32 = arith.constant 0 : i32
    %0 = arith.cmpi eq, %arg0, %c0_i32 : i32
    %1 = arith.extui %0 : i1 to i32
    %c0_i32_0 = arith.constant 0 : i32
    %2 = arith.cmpi ne, %1, %c0_i32_0 : i32
    scf.if %2 {
      %cst_9 = arith.constant 0.000000e+00 : f32
      %12 = vector.broadcast %cst_9 : f32 to vector<16x256xf32>
      %c0_10 = arith.constant 0 : index
      %c0_11 = arith.constant 0 : index
      %13 = vector.load %arg10[%c0_10, %c0_11] : memref<16x256xf32, #tpu.memory_space<vmem>>, vector<16x256xf32>
      tpu.vector_store %arg10[%c0_10, %c0_11], %12 {strides = array<i32>} : memref<16x256xf32, #tpu.memory_space<vmem>>, vector<16x256xf32>,
    } else {
    }
    %c0 = arith.constant 0 : index
    %c0_1 = arith.constant 0 : index
    %3 = vector.load %arg10[%c0, %c0_1] : memref<16x256xf32, #tpu.memory_space<vmem>>, vector<16x256xf32>
    %c0_2 = arith.constant 0 : index
    %c0_3 = arith.constant 0 : index
    %4 = vector.load %arg1[%c0_2, %c0_3] : memref<16x128xbf16, #tpu.memory_space<vmem>>, vector<16x128xbf16>
    %c0_4 = arith.constant 0 : index
    %c0_5 = arith.constant 0 : index
    %5 = vector.load %arg2[%c0_4, %c0_5] : memref<128x256xbf16, #tpu.memory_space<vmem>>, vector<128x256xbf16>
    %cst = arith.constant dense<0.000000e+00> : vector<16x256xf32>
    %6 = tpu.matmul %4, %5, %cst {dimension_numbers = #tpu.dot_dimension_numbers<[1], [0], [0], [1], [0, 0, 1, 1], [], []>} : vector<16x128xbf16>, vector<128x256xbf16>, vector<16x256xf32> -> vector<16x256xf32>
    %7 = arith.addf %3, %6 : vector<16x256xf32>
    %c0_6 = arith.constant 0 : index
    %c0_7 = arith.constant 0 : index
    %8 = vector.load %arg10[%c0_6, %c0_7] : memref<16x256xf32, #tpu.memory_space<vmem>>, vector<16x256xf32>
    tpu.vector_store %arg10[%c0_6, %c0_7], %7 {strides = array<i32>} : memref<16x256xf32, #tpu.memory_space<vmem>>, vector<16x256xf32>,
    %c1_i32 = arith.constant 1 : i32
    %9 = arith.cmpi eq, %arg0, %c1_i32 : i32
    %10 = arith.extui %9 : i1 to i32
    %c0_i32_8 = arith.constant 0 : i32
    %11 = arith.cmpi ne, %10, %c0_i32_8 : i32
    scf.if %11 {
      %c0_9 = arith.constant 0 : index
      %c0_10 = arith.constant 0 : index
      %12 = vector.load %arg10[%c0_9, %c0_10] : memref<16x256xf32, #tpu.memory_space<vmem>>, vector<16x256xf32>
      %c0_11 = arith.constant 0 : index
      %c0_12 = arith.constant 0 : index
      %13 = vector.load %arg3[%c0_11, %c0_12] : memref<1x256xf32, #tpu.memory_space<vmem>>, vector<1x256xf32>
      %14 = vector.broadcast %13 : vector<1x256xf32> to vector<16x256xf32>
      %15 = arith.addf %12, %14 : vector<16x256xf32>
      %cst_13 = arith.constant 0.000000e+00 : f32
      %16 = vector.broadcast %cst_13 : f32 to vector<16x256xf32>
      %17 = arith.maximumf %15, %16 : vector<16x256xf32>
      %c0_14 = arith.constant 0 : index
      %c0_15 = arith.constant 0 : index
      %18 = vector.load %arg10[%c0_14, %c0_15] : memref<16x256xf32, #tpu.memory_space<vmem>>, vector<16x256xf32>
      tpu.vector_store %arg10[%c0_14, %c0_15], %17 {strides = array<i32>} : memref<16x256xf32, #tpu.memory_space<vmem>>, vector<16x256xf32>,
      %c0_16 = arith.constant 0 : index
      %c0_17 = arith.constant 0 : index
      %19 = vector.load %arg10[%c0_16, %c0_17] : memref<16x256xf32, #tpu.memory_space<vmem>>, vector<16x256xf32>
      %20 = arith.truncf %19 : vector<16x256xf32> to vector<16x256xbf16>
      %c0_18 = arith.constant 0 : index
      %c0_19 = arith.constant 0 : index
      %21 = vector.load %arg4[%c0_18, %c0_19] : memref<256x128xbf16, #tpu.memory_space<vmem>>, vector<256x128xbf16>
      %cst_20 = arith.constant dense<0.000000e+00> : vector<16x128xf32>
      %22 = tpu.matmul %20, %21, %cst_20 {dimension_numbers = #tpu.dot_dimension_numbers<[1], [0], [0], [1], [0, 0, 1, 1], [], []>} : vector<16x256xbf16>, vector<256x128xbf16>, vector<16x128xf32> -> vector<16x128xf32>
      %c0_21 = arith.constant 0 : index
      %c0_22 = arith.constant 0 : index
      %23 = vector.load %arg5[%c0_21, %c0_22] : memref<1x128xf32, #tpu.memory_space<vmem>>, vector<1x128xf32>
      %24 = vector.broadcast %23 : vector<1x128xf32> to vector<16x128xf32>
      %25 = arith.addf %22, %24 : vector<16x128xf32>
      %c0_23 = arith.constant 0 : index
      %c0_24 = arith.constant 0 : index
      %26 = vector.load %arg8[%c0_23, %c0_24] : memref<16x128xf32, #tpu.memory_space<vmem>>, vector<16x128xf32>
      tpu.vector_store %arg8[%c0_23, %c0_24], %25 {strides = array<i32>} : memref<16x128xf32, #tpu.memory_space<vmem>>, vector<16x128xf32>,
      %27 = arith.truncf %25 : vector<16x128xf32> to vector<16x128xbf16>
      %c0_25 = arith.constant 0 : index
      %c0_26 = arith.constant 0 : index
      %28 = vector.load %arg6[%c0_25, %c0_26] : memref<128x128xbf16, #tpu.memory_space<vmem>>, vector<128x128xbf16>
      %cst_27 = arith.constant dense<0.000000e+00> : vector<16x128xf32>
      %29 = tpu.matmul %27, %28, %cst_27 {dimension_numbers = #tpu.dot_dimension_numbers<[1], [0], [0], [1], [0, 0, 1, 1], [], []>} : vector<16x128xbf16>, vector<128x128xbf16>, vector<16x128xf32> -> vector<16x128xf32>
      %c0_28 = arith.constant 0 : index
      %c0_29 = arith.constant 0 : index
      %30 = vector.load %arg7[%c0_28, %c0_29] : memref<1x128xf32, #tpu.memory_space<vmem>>, vector<1x128xf32>
      %31 = vector.broadcast %30 : vector<1x128xf32> to vector<16x128xf32>
      %32 = arith.addf %29, %31 : vector<16x128xf32>
      %c0_30 = arith.constant 0 : index
      %c0_31 = arith.constant 0 : index
      %33 = vector.load %arg9[%c0_30, %c0_31] : memref<16x128xf32, #tpu.memory_space<vmem>>, vector<16x128xf32>
      tpu.vector_store %arg9[%c0_30, %c0_31], %32 {strides = array<i32>} : memref<16x128xf32, #tpu.memory_space<vmem>>, vector<16x128xf32>,
    } else {
    }
    return
  }
  func.func @transform_0(%arg0: i32) -> (i32, i32) {
    %c0_i32 = arith.constant 0 : i32
    %c0_i32_0 = arith.constant 0 : i32
    return %c0_i32, %arg0 : i32, i32
  }
  func.func @transform_1(%arg0: i32) -> (i32, i32) {
    %c0_i32 = arith.constant 0 : i32
    %c0_i32_0 = arith.constant 0 : i32
    return %arg0, %c0_i32 : i32, i32
  }
  func.func @transform_2(%arg0: i32) -> (i32, i32) {
    %c0_i32 = arith.constant 0 : i32
    %c0_i32_0 = arith.constant 0 : i32
    %c0_i32_1 = arith.constant 0 : i32
    return %c0_i32, %c0_i32_0 : i32, i32
  }
  func.func @transform_3(%arg0: i32) -> (i32, i32) {
    %c0_i32 = arith.constant 0 : i32
    %c0_i32_0 = arith.constant 0 : i32
    %c0_i32_1 = arith.constant 0 : i32
    return %c0_i32, %c0_i32_0 : i32, i32
  }
  func.func @transform_4(%arg0: i32) -> (i32, i32) {
    %c0_i32 = arith.constant 0 : i32
    %c0_i32_0 = arith.constant 0 : i32
    %c0_i32_1 = arith.constant 0 : i32
    return %c0_i32, %c0_i32_0 : i32, i32
  }
  func.func @transform_5(%arg0: i32) -> (i32, i32) {
    %c0_i32 = arith.constant 0 : i32
    %c0_i32_0 = arith.constant 0 : i32
    %c0_i32_1 = arith.constant 0 : i32
    return %c0_i32, %c0_i32_0 : i32, i32
  }
  func.func @transform_6(%arg0: i32) -> (i32, i32) {
    %c0_i32 = arith.constant 0 : i32
    %c0_i32_0 = arith.constant 0 : i32
    %c0_i32_1 = arith.constant 0 : i32
    return %c0_i32, %c0_i32_0 : i32, i32
  }
  func.func @transform_7(%arg0: i32) -> (i32, i32) {
    %c0_i32 = arith.constant 0 : i32
    %c0_i32_0 = arith.constant 0 : i32
    %c0_i32_1 = arith.constant 0 : i32
    return %c0_i32, %c0_i32_0 : i32, i32
  }
  func.func @transform_8(%arg0: i32) -> (i32, i32) {
    %c0_i32 = arith.constant 0 : i32
    %c0_i32_0 = arith.constant 0 : i32
    %c0_i32_1 = arith.constant 0 : i32
    return %c0_i32, %c0_i32_0 : i32, i32
  }
}

</mosaic_0001>

<bundles_post_ra>
// kernel: mtlnc_forward.2
= control target key start
LH: loop header
LB: loop body
LE: loop exit
PB: predicated region body
PF: predicated region fallthrough
CT: control target
= control target key end

     0   :  { %8 = vsyncpa [#allocation4], 0  ;;  %s1035_s0 = inlined_call_operand.vmem [shape: bf16[8,16,128], index: 0, kind: input, shape index: {}]   ;;  %s1036_s1 = inlined_call_operand.hbm [shape: bf16[1024,256], index: 1, kind: input, shape index: {}]   ;;  %s1037_s2 = inlined_call_operand.vmem [shape: f32[1,256], index: 2, kind: input, shape index: {}]   ;;  %s1038_s3 = inlined_call_operand.vmem [shape: bf16[16,256], index: 3, kind: output, shape index: {}]  }
   0x1   :  { %10 = vsyncpa [#allocation4 + $0x1], 0  ;;  %s826_s12 = smov 0   ;;  %s828_s13 = smov 0  }
   0x2   :  { %s830_s14 = smov 0   ;;  %s832_s15 = smov 0  }
   0x3   :  { %s834_s16 = smov 0   ;;  %s836_s17 = smov 0  }
   0x4   :  { %s838_s18 = smov 0   ;;  %s840_s19 = smov 0  }
   0x5   :  { %s842_s20 = smov 0   ;;  %s844_s21 = smov 0  }
   0x6 LB: > { %s514_s22 = sadd.s32 4294967295, %s797_s21   ;;  %s25_s23 = sadd.s32 1, %s789_s19  ;;  %s797_s21 = sphi %s844_s21, %s16_s21   ;;  %s793_s20 = sphi %s842_s20, %s1055_s20   ;;  %s789_s19 = sphi %s840_s19, %s1054_s19   ;;  %s785_s18 = sphi %s838_s18, %s1053_s18   ;;  %s781_s17 = sphi %s836_s17, %s1052_s17   ;;  %s777_s16 = sphi %s834_s16, %s1051_s16   ;;  %s773_s15 = sphi %s832_s15, %s1050_s15   ;;  %s769_s14 = sphi %s830_s14, %s1049_s14   ;;  %s765_s13 = sphi %s828_s13, %s1048_s13   ;;  %s761_s12 = sphi %s826_s12, %s1047_s12  }
   0x7   : > { %p26_p0 = scmp.ge.s32.totalorder %s25_s23, 8  ;;  %s28_s24 = sadd.s32 1, %s793_s20 }
   0x8   : > { %s58_s25 = sadd.s32 1, %s777_s16  ;;  %p65_p1 = scmp.ne.s32.totalorder %s777_s16, %s773_s15 }
   0x9   : > { %s1057_s23 = smov (%p26_p0, %s25_s23), 0  ;;  %s1059_s24 = smov (!%p26_p0, %s28_s24), %s793_s20 }
   0xa   : > { %s53_s26 = ssub.s32 %s789_s19, %s1057_s23  ;;  %p66_p2 = scmp.eq.s32.totalorder %s797_s21, 0 }
   0xb   : > { %p30_p3 = scmp.ge.s32.totalorder %s1059_s24, 2  ;;  %p71_p4 = scmp.ne.s32.totalorder %s773_s15, %s769_s14 }
   0xc   : > { %p887_p5 = por %p66_p2, %p65_p1  ;;  %p72_p6 = scmp.eq.s32.totalorder %s514_s22, 0 }
   0xd   : > { %s1061_s24 = smov (%p30_p3, %s1059_s24), 0  ;;  %s110_s29 = sadd.s32 1, %s765_s13 }
   0xe   : > { %1041 = sst [smem:[#allocation7_spill]] %s1061_s24  ;;  %p893_p7 = por %p72_p6, %p71_p4 }
   0xf   : > { %s54_s30 = ssub.s32 %s793_s20, %s1061_s24  ;;  %p120_p8 = scmp.ne.s32.totalorder %s765_s13, %s761_s12 }
  0x10   : > { %s55_s4 = sor.u32 %s54_s30, %s53_s26  ;;  %p108_p9 = scmp.eq.s32.totalorder %s54_s30, 0 }
  0x11   : > { %p56_p10 = scmp.eq.s32.totalorder %s55_s4, 0  ;;  %p121_p11 = scmp.eq.s32.totalorder %s514_s22, 15 }
  0x12   : > { %s903_s5 = scalar_select %p108_p9, %s765_s13, %s110_s29  }
  0x13   : > { %s906_s6 = scalar_select %p56_p10, %s777_s16, %s58_s25  }
  0x14   : > { %p908_p12 = por %p121_p11, %p120_p8  ;;  %p589_p13 = scmp.lt.s32.totalorder %s797_s21, 16 }
  0x15   : > { %s150_s8 = sand.u32 1, %s777_s16   ;;  %s545_s10 = sshll.u32 %s789_s19, 5 }
  0x16   : > { %s1043_s7 = scalar_select %p908_p12, 1, 0 }
  0x17   : > { %s518_s9 = sshll.u32 %s150_s8, 6  ;;  %s160_s11 = sadd.s32 %s793_s20, %s545_s10 }
  0x18   : > { %s154_s14 = scalar_lea.vmem [#allocation3], %s518_s9  ;;  %s521_s26 = sshll.u32 %s160_s11, 6 }
  0x19   : > { %s163_s24 = sshll.u32 %s154_s14, 4  ;;  %s921_s29 = scalar_lea.hbm %s1036_s1, %s521_s26  ;;  %s916_s24 = int_to_ptr.vmem [resolvable:$true] %s163_s24 }
  0x1a   : > { %p925_p0 = pnand %p589_p13, %p887_p5  ;;  %s929_s4 = scalar_lea.sflag [#allocation4], %s150_s8 }
  0x1b   : > { %s685_s9 = scalar_lea.hbm %s921_s29, 1024  ;;  %s690_s11 = scalar_lea.hbm %s1036_s1, 16384 }
  0x1c   : > { %p686_p1 = scmp.ne.s32.totalorder %s921_s29, %s685_s9  ;;  %p687_p2 = pneg %p925_p0 }
  0x1d   : > { %p691_p5 = scmp.lt.u32.totalorder %s921_s29, %s1036_s1  ;;  %p692_p6 = scmp.lt.u32.totalorder %s690_s11, %s685_s9 }
  0x1e   : > { %p688_p3 = pnand %p687_p2, %p686_p1  ;;  %p694_p9 = scmp.lt.u32.totalorder %s685_s9, %s921_s29 }
  0x1f   : > { %p693_p8 = por %p692_p6, %p691_p5 }
  0x20   : > { %p689_p4 = pneg %p688_p3 }
  0x21   : > { %p695_p10 = por %p694_p9, %p693_p8 }
  0x23   : > { %p696_p11 = pnand %p695_p10, %p689_p4 }
  0x25   : > { %699 = shalt.err (!%p696_p11)
}
  0x26   : > { %s700_s8 = scalar_lea.vmem %s916_s24, 1024  ;;  %s799_s30 = smov [#allocation3]  }
  0x27   : > { %p701_p13 = scmp.ne.s32.totalorder %s916_s24, %s700_s8  ;;  %s705_s22 = sshll.u32 %s799_s30, 4  ;;  %s706_s22 = int_to_ptr.vmem [resolvable:$false] %s705_s22 }
  0x28   : > { %s707_s27 = scalar_lea.vmem %s706_s22, 2048  ;;  %p708_p12 = scmp.lt.s32.totalorder %s916_s24, %s706_s22 }
  0x29   : > { %p703_p1 = pnand %p701_p13, %p687_p2  ;;  %p709_p5 = scmp.lt.s32.totalorder %s707_s27, %s700_s8 }
  0x2b   : > { %p704_p3 = pneg %p703_p1  ;;  %p710_p6 = por %p709_p5, %p708_p12 }
  0x2d   : > { %p711_p8 = pnand %p710_p6, %p704_p3 }
  0x2f   : > { %714 = shalt.err (!%p711_p8)
}
  0x30   : > { %s800_s9 = smov 128   ;;  %s801_s10 = smov 64  }
  0x31   : > { %s802_s11 = smov 4   ;;  %p522_p2 = scmp.ge.s32.totalorder %s797_s21, 1 }
  0x32   : > { %588 = dma.hbm_to_vmem [thread:$0]  (!%p925_p0), %s921_s29, 1024, %s916_s24, %s929_s4, %s800_s9, %s801_s10, %s802_s11  }
  0x33   : > { %p177_p4 = scmp.lt.s32.totalorder %s797_s21, 17 }
  0x35   : > { %p178_p9 = pnand %p522_p2, %p177_p4 }
  0x36   : > { %s183_s14 = sand.u32 (!%p178_p9), 1, %s773_s15  }
  0x37   : > { %181 = sbr.rel (%p178_p9) target bundleno = 346 (0x15a), region = 32  ;;  %s523_s26 = sshll.u32 (!%p178_p9), %s183_s14, 6 }
  0x38   : > { %s184_s8 = scalar_lea.sflag (!%p178_p9), [#allocation4], %s183_s14  ;;  %s960_s30 = scalar_lea.vmem (!%p178_p9), [#allocation3], %s523_s26 }
  0x3e   : > { %756 = dma.done.wait (%p893_p7), %s184_s8, 1024  }
  0x3f   : > { %758 = vsyncadd (%p893_p7), %s184_s8, 4294966272  ;;  %s209_s24 = sand.u32 1, %s761_s12   ;;  %p213_p12 = scmp.lt.s32.totalorder %s785_s18, 1 }
  0x40   : > { %s524_s29 = sshll.u32 %s209_s24, 3  ;;  %p525_p0 = scmp.ne.s32.totalorder %s781_s17, 0 }
  0x41   : > { %s969_s25 = scalar_select %p213_p12, %s785_s18, 1 }
  0x42   : > { %s975_s9 = scalar_lea.vmem [#allocation5], %s524_s29  ;;  %220 = sbr.rel (%p525_p0) target bundleno = 73 (0x49), region = 40  ;;  %v803_v0 = vmov (!%p525_p0), 0.0  }
  0x43   : > { %s215_s27 = scalar_lea.vmem %s1037_s2, %s969_s25  ;;  %221 = vst [vmem:[#allocation2] sm:$0xff] (!%p525_p0), %v803_v0  ;;  %222 = vst [vmem:[#allocation2 + $0x8] sm:$0xff] (!%p525_p0), %v803_v0 }
  0x49 PF: > { %v676_v1 = vld [vmem:[%s960_s30] sm:$0xff]   ;;  %v804_v2 = vmov 0.0   ;;  %v677_v3 = vld [vmem:[%s960_s30 + $0x8] sm:$0xff]   ;;  %vm805_vm0 = vmmov 0   ;;  %s546_s12 = sshll.u32 %s781_s17, 3  ;;  %v678_v4 = vld [vmem:[%s960_s30 + $0x10] sm:$0xff]  }
  0x4a   : > { %563 = vmatprep.subr.bf16.mxu0 %v804_v2  ;;  %579 = vmatprep.mubr.msk.bf16.mxu0 %vm805_vm0, %v804_v2  ;;  %s227_s11 = scalar_lea.vmem %s1035_s0, %s546_s12  ;;  %v679_v5 = vld [vmem:[%s960_s30 + $0x18] sm:$0xff]   ;;  %v680_v6 = vld [vmem:[%s960_s30 + $0x20] sm:$0xff]   ;;  %v681_v7 = vld [vmem:[%s960_s30 + $0x28] sm:$0xff]   ;;  %p537_p7 = scmp.ne.s32.totalorder %s781_s17, 7 }
  0x4b   : > { %564 = vmatpush3.bf16.msra.mxu0 %v676_v1  ;;  %v682_v8 = vld [vmem:[%s960_s30 + $0x30] sm:$0xff]   ;;  %v683_v9 = vld [vmem:[%s960_s30 + $0x38] sm:$0xff]  }
  0x4c   : > { %565 = vmatprep.subr.bf16.mxu0 %v804_v2  ;;  %v684_v10 = vld [vmem:[%s227_s11] sm:$0xff]   ;;  %v224_v13 = vld [vmem:[#allocation2 + $0x8] sm:$0xff] }
  0x4d   : > { %v223_v11 = vld [vmem:[#allocation2] sm:$0xff] }
  0x4e   : > { %v538_v20 = vld [vmem:[%s215_s27] ss:$0 sm:$0xff] (!%p537_p7) }
  0x4f   : > { %566 = vmatpush3.bf16.msra.mxu0 %v677_v3 }
  0x50   : > { %567 = vmatprep.subr.bf16.mxu0 %v804_v2 }
  0x53   : > { %568 = vmatpush3.bf16.msra.mxu0 %v678_v4 }
  0x54   : > { %569 = vmatprep.subr.bf16.mxu0 %v804_v2 }
  0x57   : > { %570 = vmatpush3.bf16.msra.mxu0 %v679_v5 }
  0x58   : > { %571 = vmatprep.subr.bf16.mxu0 %v804_v2 }
  0x5b   : > { %572 = vmatpush3.bf16.msra.mxu0 %v680_v6 }
  0x5c   : > { %573 = vmatprep.subr.bf16.mxu0 %v804_v2 }
  0x5f   : > { %574 = vmatpush3.bf16.msra.mxu0 %v681_v7 }
  0x60   : > { %575 = vmatprep.subr.bf16.mxu0 %v804_v2 }
  0x63   : > { %576 = vmatpush3.bf16.msra.mxu0 %v682_v8 }
  0x64   : > { %577 = vmatprep.subr.bf16.mxu0 %v804_v2 }
  0x67   : > { %578 = vmatpush3.bf16.msra.mxu0 %v683_v9 }
  0x6a   : > { %580 = vmatmul.mubr.bf16.vlgmr.msra.gmra.mrb[0].mxu0 %v684_v10 }
 0x13c   : > { %348 = sbr.rel (%p537_p7) target bundleno = 337 (0x151), region = 44 }
 0x13d   : > { %v334_v12 = vpop.f32.mrb[0].mxu0 }
 0x13e   : > { %v341_v14 = vadd.f32 %v334_v12, %v223_v11  ;;  %v581_v15 = vpop.f32.mrb[1].mxu0 }
 0x13f   : > { %v337_v16 = vpop.f32.mrb[2].mxu0 }
 0x140   : > { %343 = vst [vmem:[#allocation2] sm:$0xff] %v341_v14  ;;  %v342_v17 = vadd.f32 %v337_v16, %v224_v13  ;;  %v582_v18 = vpop.f32.mrb[3].mxu0 }
 0x142   : > { %344 = vst [vmem:[#allocation2 + $0x8] sm:$0xff] %v342_v17 }
 0x147   : > { %v349_v19 = vld [vmem:[#allocation2] sm:$0xff] }
 0x148   : > { %v358_v22 = vadd.f32 %v538_v20, %v349_v19 }
 0x149   : > { %v350_v21 = vld [vmem:[#allocation2 + $0x8] sm:$0xff] }
 0x14a   : > { %v359_v23 = vadd.f32 %v538_v20, %v350_v21  ;;  %v360_v24 = vmax.f32 %v358_v22, 0.0 }
 0x14c   : > { %v361_v25 = vmax.f32 %v359_v23, 0.0  ;;  %362 = vst [vmem:[#allocation2] sm:$0xff] %v360_v24 }
 0x14e   : > { %363 = vst [vmem:[#allocation2 + $0x8] sm:$0xff] %v361_v25  ;;  %v552_v26 = vpack.c.bf16 %v361_v25, %v360_v24 }
 0x150   : > { %553 = vst [vmem:[%s975_s9] sm:$0xff] %v552_v26  }
 0x151 PF: > { %p1045_p10 = scmp.ne.s32.totalorder %s1043_s7, 0 }
 0x152   : > { %s542_s17 = sshll.u32 (%p1045_p10), %s785_s18, 2 }
 0x153   : > { %382 = sbr.rel (!%p1045_p10) target bundleno = 346 (0x15a), region = 48  ;;  %s384_s24 = scalar_lea.vmem (%p1045_p10), %s1038_s3, %s542_s17 }
 0x157   : > { %v400_v27 = vld [vmem:[%s975_s9] sm:$0xf] (%p1045_p10)  ;;  %v402_v28 = vld [vmem:[%s975_s9 + $0x4] sm:$0xf] (%p1045_p10) }
 0x158   : > { %401 = vst [vmem:[%s384_s24] sm:$0xf] (%p1045_p10), %v400_v27  ;;  %403 = vst [vmem:[%s384_s24 + $0x8] sm:$0xf] (%p1045_p10), %v402_v28 }
 0x15a PF: > { %s16_s21 = sadd.s32 1, %s797_s21   ;;  %s1046_s7 = sld [smem:[#allocation7_spill]] }
 0x15b   : > { %p13_p11 = scmp.ge.s32.totalorder %s16_s21, 18   ;;  %s1047_s12 = smov %s765_s13 }
 0x15c   : > { %s1048_s13 = smov %s903_s5  ;;  %s1049_s14 = smov %s773_s15 }
 0x15d   : > { %s1050_s15 = smov %s777_s16  ;;  %s1051_s16 = smov %s906_s6 }
 0x15e   : > { %s1052_s17 = smov %s789_s19  ;;  %s1053_s18 = smov %s793_s20 }
 0x15f   : > { %s1054_s19 = smov %s1057_s23  ;;  %15 = sbr.rel (!%p13_p11) target bundleno = 6 (0x6), region = 125 }
 0x160   : > { %s1055_s20 = smov %s1046_s7 }
 0x166   :  { %440 = vsyncpa [#allocation4], 1 }
 0x167   :  { %442 = vsyncpa [#allocation4 + $0x1], 1 }

// kernel: mtlnc_forward.3
= control target key start
LH: loop header
LB: loop body
LE: loop exit
PB: predicated region body
PF: predicated region fallthrough
CT: control target
= control target key end

     0   :  { %s1169_s27 = smov 0   ;;  %s1171_s28 = smov 0   ;;  %s1339_s0 = inlined_call_operand.vmem [shape: bf16[16,256], index: 0, kind: input, shape index: {}]   ;;  %s1340_s1 = inlined_call_operand.vmem [shape: bf16[256,256], index: 1, kind: input, shape index: {}]   ;;  %s1341_s2 = inlined_call_operand.vmem [shape: f32[1,256], index: 2, kind: input, shape index: {}]   ;;  %s1342_s3 = inlined_call_operand.vmem [shape: bf16[256,128], index: 3, kind: input, shape index: {}]   ;;  %s1343_s4 = inlined_call_operand.vmem [shape: f32[1,128], index: 4, kind: input, shape index: {}]   ;;  %s1344_s5 = inlined_call_operand.vmem [shape: bf16[128,128], index: 5, kind: input, shape index: {}]   ;;  %s1345_s6 = inlined_call_operand.vmem [shape: f32[1,128], index: 6, kind: input, shape index: {}]   ;;  %s1346_s7 = inlined_call_operand.vmem [shape: f32[16,128], index: 7, kind: output, shape index: {0}]   ;;  %s1347_s8 = inlined_call_operand.vmem [shape: f32[16,128], index: 8, kind: output, shape index: {1}]  }
   0x1   :  { %s1173_s29 = smov 0  }
   0x2 LB: > { %s1182_s30 = sadd.s32 4294967295, %s1118_s29   ;;  %s1184_s9 = sadd.s32 1, %s1118_s29   ;;  %s1118_s29 = sphi %s1173_s29, %s1350_s29   ;;  %s1114_s28 = sphi %s1171_s28, %s1349_s28   ;;  %s1110_s27 = sphi %s1169_s27, %s1348_s27  }
   0x3   : > { %s23_s10 = ssub.s32 %s1118_s29, %s1184_s9  ;;  %s26_s11 = sadd.s32 1, %s1114_s28 }
   0x4   : > { %p24_p0 = scmp.eq.s32.totalorder %s23_s10, 0  ;;  %p33_p1 = scmp.ne.s32.totalorder %s1114_s28, %s1110_s27 }
   0x5   : > { %p34_p2 = scmp.eq.s32.totalorder %s1118_s29, 0  ;;  %p912_p4 = scmp.ge.s32.totalorder %s1118_s29, 2 }
   0x6   : > { %s1191_s12 = scalar_select %p24_p0, %s1114_s28, %s26_s11  }
   0x7   : > { %p35_p3 = por %p34_p2, %p33_p1  ;;  %247 = sbr.rel (%p912_p4) target bundleno = 21 (0x15), region = 36 }
   0xe   : > { %250 = sbr.rel (!%p35_p3) target bundleno = 21 (0x15), region = 40  ;;  %s252_s13 = sand.u32 (%p35_p3), 1, %s1114_s28  }
   0xf   : > { %s914_s14 = sshll.u32 (%p35_p3), %s1118_s29, 2  ;;  %s913_s15 = sshll.u32 (%p35_p3), %s252_s13, 3 }
  0x10   : > { %s256_s18 = scalar_lea.vmem (%p35_p3), %s1339_s0, %s914_s14  ;;  %s254_s19 = scalar_lea.vmem (%p35_p3), [#allocation3], %s913_s15 }
  0x11   : > { %v272_v0 = vld [vmem:[%s256_s18] sm:$0xf] (%p35_p3)  ;;  %v274_v1 = vld [vmem:[%s256_s18 + $0x8] sm:$0xf] (%p35_p3) }
  0x12   : > { %273 = vst [vmem:[%s254_s19] sm:$0xf] (%p35_p3), %v272_v0  ;;  %275 = vst [vmem:[%s254_s19 + $0x4] sm:$0xf] (%p35_p3), %v274_v1 }
  0x15 PF: > { %p915_p5 = scmp.ge.s32.totalorder %s1118_s29, 1  ;;  %p311_p6 = scmp.lt.s32.totalorder %s1118_s29, 3 }
  0x17   : > { %p312_p7 = pnand %p915_p5, %p311_p6 }
  0x18   : > { %s318_s20 = sand.u32 (!%p312_p7), 1, %s1110_s27   ;;  %s917_s21 = sshll.u32 (!%p312_p7), %s1182_s30, 4 }
  0x19   : > { %315 = sbr.rel (%p312_p7) target bundleno = 742 (0x2e6), region = 85  ;;  %s1199_s22 = sshll.u32 (!%p312_p7), %s318_s20, 3 }
  0x1a   : > { %p353_p8 = scmp.lt.s32.totalorder (!%p312_p7), %s917_s21, 31  ;;  %s320_s10 = scalar_lea.vmem (!%p312_p7), [#allocation3], %s1199_s22 }
  0x1b   : > { %p920_p9 = scmp.ne.s32.totalorder (!%p312_p7), %s1182_s30, 0 }
  0x20   : > { %s1352_s21 = smov (!%p353_p8, %s917_s21), 31  ;;  %363 = sbr.rel (%p920_p9) target bundleno = 39 (0x27), region = 93 }
  0x21   : > { %s967_s23 = sshll.u32 %s1352_s21, 3  ;;  %v1120_v2 = vmov (!%p920_p9), 0.0  }
  0x22   : > { %s1204_s26 = scalar_lea.vmem %s1340_s1, %s967_s23  ;;  %364 = vst [vmem:[#allocation2] sm:$0xff] (!%p920_p9), %v1120_v2  ;;  %365 = vst [vmem:[#allocation2 + $0x8] sm:$0xff] (!%p920_p9), %v1120_v2 }
  0x23   : > { %366 = vst [vmem:[#allocation2 + $0x10] sm:$0xff] (!%p920_p9), %v1120_v2  ;;  %367 = vst [vmem:[#allocation2 + $0x18] sm:$0xff] (!%p920_p9), %v1120_v2 }
  0x27 PF: > { %v1047_v3 = vld [vmem:[%s1204_s26 + $0x4] ss:$8 sps:$4 sm:$0xff]   ;;  %v1049_v4 = vld [vmem:[%s1204_s26] ss:$8 sps:$4 sm:$0xff]   ;;  %v1121_v5 = vmov 0   ;;  %p938_p10 = scmp.ne.s32.totalorder %s1182_s30, 1 }
  0x28   : > { %508 = vmatprep.mubr.bf16.mxu0 %v1121_v5  ;;  %476 = vmatprep.subr.bf16.mxu0 %v1047_v3  ;;  %v1050_v6 = vld [vmem:[%s1204_s26 + $0x14] ss:$8 sps:$4 sm:$0xff]   ;;  %v1052_v7 = vld [vmem:[%s1204_s26 + $0x10] ss:$8 sps:$4 sm:$0xff]   ;;  %v1053_v8 = vld [vmem:[%s1204_s26 + $0x24] ss:$8 sps:$4 sm:$0xff]   ;;  %v537_v39 = vlaneseq (!%p938_p10) }
  0x29   : > { %477 = vmatpush1.bf16.msra.mxu0 %v1049_v4  ;;  %v1055_v9 = vld [vmem:[%s1204_s26 + $0x20] ss:$8 sps:$4 sm:$0xff]   ;;  %v1056_v10 = vld [vmem:[%s1204_s26 + $0x34] ss:$8 sps:$4 sm:$0xff]   ;;  %v1058_v11 = vld [vmem:[%s1204_s26 + $0x30] ss:$8 sps:$4 sm:$0xff]  }
  0x2a   : > { %478 = vmatprep.subr.bf16.mxu0 %v1050_v6  ;;  %v1059_v12 = vld [vmem:[%s1204_s26 + $0x44] ss:$8 sps:$4 sm:$0xff]   ;;  %v1061_v13 = vld [vmem:[%s1204_s26 + $0x40] ss:$8 sps:$4 sm:$0xff]   ;;  %v1062_v14 = vld [vmem:[%s1204_s26 + $0x54] ss:$8 sps:$4 sm:$0xff]  }
  0x2b   : > { %v1064_v15 = vld [vmem:[%s1204_s26 + $0x50] ss:$8 sps:$4 sm:$0xff]   ;;  %v1065_v16 = vld [vmem:[%s1204_s26 + $0x64] ss:$8 sps:$4 sm:$0xff]   ;;  %v1067_v17 = vld [vmem:[%s1204_s26 + $0x60] ss:$8 sps:$4 sm:$0xff]  }
  0x2c   : > { %v1068_v18 = vld [vmem:[%s1204_s26 + $0x74] ss:$8 sps:$4 sm:$0xff]   ;;  %v1070_v19 = vld [vmem:[%s1204_s26 + $0x70] ss:$8 sps:$4 sm:$0xff]   ;;  %v1071_v20 = vld [vmem:[%s320_s10] sm:$0xff]   ;;  %v1122_v35 = vmov (!%p938_p10), 0.0  }
  0x2d   : > { %479 = vmatpush1.bf16.msra.mxu0 %v1052_v7  ;;  %v368_v21 = vld [vmem:[#allocation2] sm:$0xff]  ;;  %v369_v22 = vld [vmem:[#allocation2 + $0x8] sm:$0xff]  ;;  %v370_v24 = vld [vmem:[#allocation2 + $0x10] sm:$0xff]  ;;  %999 = vmatprep.subr.bf16.mxu1 (!%p938_p10), %v1122_v35  ;;  %v538_v42 = vshrl.u32 (!%p938_p10), %v537_v39, 7  ;;  %vm1123_vm0 = vmmov (!%p938_p10), 0  }
  0x2e   : > { %480 = vmatprep.subr.bf16.mxu0 %v1053_v8  ;;  %v371_v27 = vld [vmem:[#allocation2 + $0x18] sm:$0xff]  ;;  %v1072_v33 = vld [vmem:[%s1342_s3 + $0x40] sm:$0xff] (!%p938_p10)   ;;  %v1074_v36 = vld [vmem:[%s1342_s3 + $0x48] sm:$0xff] (!%p938_p10)   ;;  %1015 = vmatprep.mubr.msk.bf16.mxu1 (!%p938_p10), %vm1123_vm0, %v1122_v35 }
  0x2f   : > { %v1073_v34 = vld [vmem:[%s1342_s3] sm:$0xff] (!%p938_p10)   ;;  %v1075_v37 = vld [vmem:[%s1342_s3 + $0x8] sm:$0xff] (!%p938_p10)   ;;  %v1076_v38 = vld [vmem:[%s1342_s3 + $0x50] sm:$0xff] (!%p938_p10)   ;;  %v539_v45 = vsub.s32 (!%p938_p10), 0, %v538_v42  ;;  %v543_v46 = vsub.s32 (!%p938_p10), 1, %v538_v42 }
  0x30   : > { %v1077_v40 = vld [vmem:[%s1342_s3 + $0x10] sm:$0xff] (!%p938_p10)   ;;  %v1078_v41 = vld [vmem:[%s1342_s3 + $0x58] sm:$0xff] (!%p938_p10)   ;;  %v1080_v44 = vld [vmem:[%s1342_s3 + $0x60] sm:$0xff] (!%p938_p10)  }
  0x31   : > { %481 = vmatpush1.bf16.msra.mxu0 %v1055_v9  ;;  %v1079_v43 = vld [vmem:[%s1342_s3 + $0x18] sm:$0xff] (!%p938_p10)   ;;  %v1081_v47 = vld [vmem:[%s1342_s3 + $0x20] sm:$0xff] (!%p938_p10)   ;;  %v1082_v48 = vld [vmem:[%s1342_s3 + $0x68] sm:$0xff] (!%p938_p10)  }
  0x32   : > { %482 = vmatprep.subr.bf16.mxu0 %v1056_v10  ;;  %v535_v51 = vld [vmem:[%s1341_s2] sm:$0x3] (!%p938_p10)  ;;  %v1083_v52 = vld [vmem:[%s1342_s3 + $0x28] sm:$0xff] (!%p938_p10)   ;;  %v1084_v58 = vld [vmem:[%s1342_s3 + $0x70] sm:$0xff] (!%p938_p10)  }
  0x33   : > { %v540_v53 = vrot.slane (!%p938_p10), %v535_v51, %v539_v45  ;;  %v544_v54 = vrot.slane (!%p938_p10), %v535_v51, %v543_v46  ;;  %v1088_v57 = vld [vmem:[%s1344_s5] sm:$0xff] (!%p938_p10)   ;;  %v1089_v63 = vld [vmem:[%s1344_s5 + $0x8] sm:$0xff] (!%p938_p10)   ;;  %v1085_v4 = vld [vmem:[%s1342_s3 + $0x30] sm:$0xff] (!%p938_p10)  }
  0x34   : > { %1000 = vmatpush3.bf16.msra.mxu1 (!%p938_p10), %v1088_v57  ;;  %v1086_v5 = vld [vmem:[%s1342_s3 + $0x78] sm:$0xff] (!%p938_p10)   ;;  %v1090_v7 = vld [vmem:[%s1344_s5 + $0x10] sm:$0xff] (!%p938_p10)  }
  0x35   : > { %483 = vmatpush1.bf16.msra.mxu0 %v1058_v11  ;;  %1001 = vmatprep.subr.bf16.mxu1 (!%p938_p10), %v1122_v35  ;;  %v1087_v8 = vld [vmem:[%s1342_s3 + $0x38] sm:$0xff] (!%p938_p10)   ;;  %v1092_v11 = vld [vmem:[%s1344_s5 + $0x20] sm:$0xff] (!%p938_p10)  }
  0x36   : > { %484 = vmatprep.subr.bf16.mxu0 %v1059_v12  ;;  %v1091_v9 = vld [vmem:[%s1344_s5 + $0x18] sm:$0xff] (!%p938_p10)   ;;  %v1093_v12 = vld [vmem:[%s1344_s5 + $0x28] sm:$0xff] (!%p938_p10)  }
  0x38   : > { %1002 = vmatpush3.bf16.msra.mxu1 (!%p938_p10), %v1089_v63 }
  0x39   : > { %485 = vmatpush1.bf16.msra.mxu0 %v1061_v13  ;;  %1003 = vmatprep.subr.bf16.mxu1 (!%p938_p10), %v1122_v35  ;;  %v1094_v13 = vld [vmem:[%s1344_s5 + $0x30] sm:$0xff] (!%p938_p10)  }
  0x3a   : > { %486 = vmatprep.subr.bf16.mxu0 %v1062_v14  ;;  %v1095_v14 = vld [vmem:[%s1344_s5 + $0x38] sm:$0xff] (!%p938_p10)  }
  0x3c   : > { %1004 = vmatpush3.bf16.msra.mxu1 (!%p938_p10), %v1090_v7 }
  0x3d   : > { %487 = vmatpush1.bf16.msra.mxu0 %v1064_v15  ;;  %1005 = vmatprep.subr.bf16.mxu1 (!%p938_p10), %v1122_v35 }
  0x3e   : > { %488 = vmatprep.subr.bf16.mxu0 %v1065_v16  ;;  %v939_v16 = vld [vmem:[%s1343_s4] ss:$0 sm:$0xff] (!%p938_p10) }
  0x40   : > { %1006 = vmatpush3.bf16.msra.mxu1 (!%p938_p10), %v1091_v9 }
  0x41   : > { %489 = vmatpush1.bf16.msra.mxu0 %v1067_v17  ;;  %1007 = vmatprep.subr.bf16.mxu1 (!%p938_p10), %v1122_v35 }
  0x42   : > { %490 = vmatprep.subr.bf16.mxu0 %v1068_v18 }
  0x44   : > { %1008 = vmatpush3.bf16.msra.mxu1 (!%p938_p10), %v1092_v11 }
  0x45   : > { %491 = vmatpush1.bf16.msra.mxu0 %v1070_v19  ;;  %1009 = vmatprep.subr.bf16.mxu1 (!%p938_p10), %v1122_v35 }
  0x46   : > { %968 = vmatprep.subr.bf16.mxu0 (!%p938_p10), %v1072_v33 }
  0x48   : > { %509 = vmatmul.mubr.bf16.vlgmr.msra.gmra.mrb[0].mxu0 %v1071_v20  ;;  %1010 = vmatpush3.bf16.msra.mxu1 (!%p938_p10), %v1093_v12 }
  0x49   : > { %969 = vmatpush3.bf16.msra.mxu0 (!%p938_p10), %v1073_v34  ;;  %1011 = vmatprep.subr.bf16.mxu1 (!%p938_p10), %v1122_v35 }
  0x4a   : > { %970 = vmatprep.subr.bf16.mxu0 (!%p938_p10), %v1074_v36 }
  0x4c   : > { %1012 = vmatpush3.bf16.msra.mxu1 (!%p938_p10), %v1094_v13 }
  0x4d   : > { %971 = vmatpush3.bf16.msra.mxu0 (!%p938_p10), %v1075_v37  ;;  %1013 = vmatprep.subr.bf16.mxu1 (!%p938_p10), %v1122_v35 }
  0x4e   : > { %972 = vmatprep.subr.bf16.mxu0 (!%p938_p10), %v1076_v38 }
  0x50   : > { %1014 = vmatpush3.bf16.msra.mxu1 (!%p938_p10), %v1095_v14 }
  0x51   : > { %973 = vmatpush3.bf16.msra.mxu0 (!%p938_p10), %v1077_v40 }
  0x52   : > { %974 = vmatprep.subr.bf16.mxu0 (!%p938_p10), %v1078_v41 }
  0x55   : > { %975 = vmatpush3.bf16.msra.mxu0 (!%p938_p10), %v1079_v43 }
  0x56   : > { %976 = vmatprep.subr.bf16.mxu0 (!%p938_p10), %v1080_v44 }
  0x59   : > { %977 = vmatpush3.bf16.msra.mxu0 (!%p938_p10), %v1081_v47 }
  0x5a   : > { %978 = vmatprep.subr.bf16.mxu0 (!%p938_p10), %v1082_v48 }
  0x5d   : > { %979 = vmatpush3.bf16.msra.mxu0 (!%p938_p10), %v1083_v52 }
  0x5e   : > { %980 = vmatprep.subr.bf16.mxu0 (!%p938_p10), %v1084_v58 }
  0x61   : > { %981 = vmatpush3.bf16.msra.mxu0 (!%p938_p10), %v1085_v4 }
  0x62   : > { %982 = vmatprep.subr.bf16.mxu0 (!%p938_p10), %v1086_v5 }
  0x65   : > { %983 = vmatpush3.bf16.msra.mxu0 (!%p938_p10), %v1087_v8 }
 0x11b   : > { %v510_v23 = vpop.f32.mrb[0].mxu0  ;;  %530 = sbr.rel (%p938_p10) target bundleno = 742 (0x2e6), region = 97 }
 0x11c   : > { %v519_v25 = vadd.f32 %v510_v23, %v368_v21  ;;  %v512_v26 = vpop.f32.mrb[1].mxu0 }
 0x11d   : > { %v520_v28 = vadd.f32 %v512_v26, %v369_v22  ;;  %v514_v29 = vpop.f32.mrb[2].mxu0 }
 0x11e   : > { %523 = vst [vmem:[#allocation2] sm:$0xff] %v519_v25  ;;  %v521_v30 = vadd.f32 %v514_v29, %v370_v24  ;;  %v516_v31 = vpop.f32.mrb[3].mxu0  ;;  %v956_v25 = vld [vmem:[%s1345_s6] ss:$0 sm:$0xff] (!%p938_p10) }
 0x11f   : > { %524 = vst [vmem:[#allocation2 + $0x8] sm:$0xff] %v520_v28  ;;  %v522_v32 = vadd.f32 %v516_v31, %v371_v27 }
 0x120   : > { %525 = vst [vmem:[#allocation2 + $0x10] sm:$0xff] %v521_v30 }
 0x121   : > { %526 = vst [vmem:[#allocation2 + $0x18] sm:$0xff] %v522_v32 }
 0x125   : > { %v531_v55 = vld [vmem:[#allocation2] sm:$0xff] }
 0x126   : > { %v532_v49 = vld [vmem:[#allocation2 + $0x8] sm:$0xff]  ;;  %v547_v61 = vadd.f32 %v540_v53, %v531_v55 }
 0x127   : > { %v533_v56 = vld [vmem:[#allocation2 + $0x10] sm:$0xff]  ;;  %v548_v59 = vadd.f32 %v544_v54, %v532_v49 }
 0x128   : > { %v534_v50 = vld [vmem:[#allocation2 + $0x18] sm:$0xff]  ;;  %v549_v62 = vadd.f32 %v540_v53, %v533_v56  ;;  %v551_v2 = vmax.f32 %v547_v61, 0.0 }
 0x129   : > { %v550_v60 = vadd.f32 %v544_v54, %v534_v50  ;;  %v552_v0 = vmax.f32 %v548_v59, 0.0 }
 0x12a   : > { %v553_v3 = vmax.f32 %v549_v62, 0.0  ;;  %555 = vst [vmem:[#allocation2] sm:$0xff] %v551_v2 }
 0x12b   : > { %v554_v1 = vmax.f32 %v550_v60, 0.0  ;;  %556 = vst [vmem:[#allocation2 + $0x8] sm:$0xff] %v552_v0 }
 0x12c   : > { %557 = vst [vmem:[#allocation2 + $0x10] sm:$0xff] %v553_v3  ;;  %v563_v10 = vpack.c.bf16 %v553_v3, %v551_v2 }
 0x12d   : > { %558 = vst [vmem:[#allocation2 + $0x18] sm:$0xff] %v554_v1  ;;  %v564_v6 = vpack.c.bf16 %v554_v1, %v552_v0 }
 0x12f   : > { %732 = vmatprep.mubr.bf16.mxu0 %v564_v6 }
 0x130   : > { %733 = vmatmul.mubr.bf16.vlgmr.msra.gmra.mrb[0].mxu0 %v563_v10 }
 0x203   : > { %v984_v15 = vpop.f32.mrb[0].mxu0 }
 0x204   : > { %v985_v17 = vpop.f32.mrb[1].mxu0 }
 0x205   : > { %v986_v18 = vadd.f32 %v985_v17, %v984_v15  ;;  %v987_v19 = vpop.f32.mrb[2].mxu0 }
 0x206   : > { %v988_v20 = vpop.f32.mrb[3].mxu0 }
 0x207   : > { %v735_v21 = vadd.f32 %v986_v18, %v939_v16  ;;  %v989_v22 = vadd.f32 %v988_v20, %v987_v19 }
 0x209   : > { %741 = vst [vmem:[%s1346_s7] sm:$0xff] %v735_v21  ;;  %v738_v23 = vadd.f32 %v989_v22, %v939_v16 }
 0x20b   : > { %742 = vst [vmem:[%s1346_s7 + $0x8] sm:$0xff] %v738_v23  ;;  %v743_v24 = vpack.c.bf16 %v738_v23, %v735_v21 }
 0x20d   : > { %1016 = vmatmul.mubr.bf16.vlgmr.msra.gmra.mrb[0].mxu1 %v743_v24 }
 0x2e0   : > { %v849_v26 = vpop.f32.mrb[0].mxu1 }
 0x2e1   : > { %v850_v27 = vadd.f32 %v956_v25, %v849_v26  ;;  %v1017_v28 = vpop.f32.mrb[1].mxu1 }
 0x2e2   : > { %v852_v29 = vpop.f32.mrb[2].mxu1 }
 0x2e3   : > { %856 = vst [vmem:[%s1347_s8] sm:$0xff] %v850_v27  ;;  %v853_v30 = vadd.f32 %v956_v25, %v852_v29  ;;  %v1018_v31 = vpop.f32.mrb[3].mxu1 }
 0x2e5   : > { %857 = vst [vmem:[%s1347_s8 + $0x8] sm:$0xff] %v853_v30 }
 0x2e6 PF: > { %p16_p11 = scmp.ge.s32.totalorder %s1184_s9, 4   ;;  %s1348_s27 = smov %s1114_s28 }
 0x2e7   : > { %s1349_s28 = smov %s1191_s12  ;;  %s1350_s29 = smov %s1184_s9 }
 0x2e8   :  { %18 = sbr.rel (!%p16_p11) target bundleno = 2 (0x2), region = 139 }

</bundles_post_ra>
